<compile_context>
chip_gen: v7x
topology: tpu7x:2x2x1
jax: 0.10.0
libtpu: 0.0.40
codegen_flags: <defaults>
</compile_context>

<pallas_src>
import functools

import jax
import jax.numpy as jnp
from jax.experimental import pallas as pl
from jax.experimental.pallas import tpu as pltpu  # noqa: F401  (kept for TPU backend)

APPROX_SOFTMAX_RECIP = True  # EUP vrcp for the softmax denominator (inference-grade).


# ----------------------------------------------------------------------------
# Pallas kernel: full encoder-block forward on a fused (B*S, E) token slab.
# ----------------------------------------------------------------------------
def encoder_kernel(x_ref,
                   qwt_ref, kwt_ref, vwt_ref, qb_ref, kb_ref, vb_ref,
                   opwt_ref, opb_ref, lnw_ref, lnb_ref,
                   w1t_ref, b1_ref, w2t_ref, b2_ref,
                   o_ref, *, batch, seq, num_heads):
    x = x_ref[...]                                   # (B*S, E) float32
    M, E = x.shape
    hd = E // num_heads
    xb = x.astype(jnp.bfloat16)

    # ---- separate Q/K/V projections (bf16 operands, f32 accumulation).
    #      1/sqrt(head_dim) is already folded into the Q weights/bias.
    q = jnp.dot(xb, qwt_ref[...], preferred_element_type=jnp.float32) + qb_ref[...]
    k = jnp.dot(xb, kwt_ref[...], preferred_element_type=jnp.float32) + kb_ref[...]
    v = jnp.dot(xb, vwt_ref[...], preferred_element_type=jnp.float32) + vb_ref[...]

    opb = opb_ref[...]                               # (1, E) f32

    # ---- per-(batch, head) attention with the output projection folded in.
    #      Each head contributes head @ out_proj_w^T[c0:c0+hd, :] (sublane-aligned
    #      row-slice of the E x E weight) to a per-batch (S, E) f32 accumulator.
    batch_attn = []
    for b in range(batch):
        r0 = b * seq
        acc = jnp.broadcast_to(opb, (seq, E)).astype(jnp.float32)   # bias added once
        for h in range(num_heads):
            c0 = h * hd
            qh = q[r0:r0 + seq, c0:c0 + hd].astype(jnp.bfloat16)    # (S, hd)
            kh = k[r0:r0 + seq, c0:c0 + hd].astype(jnp.bfloat16)    # (S, hd)
            vh = v[r0:r0 + seq, c0:c0 + hd].astype(jnp.bfloat16)    # (S, hd)

            # scores = qh @ kh^T (contract head dim), f32 accumulation on the MXU
            s = jax.lax.dot_general(qh, kh, (((1,), (1,)), ((), ())),
                                    preferred_element_type=jnp.float32)  # (S, S)
            s = s - jnp.max(s, axis=-1, keepdims=True)
            p = jnp.exp(s)
            denom = jnp.sum(p, axis=-1, keepdims=True)
            if APPROX_SOFTMAX_RECIP:
                p = p * pl.reciprocal(denom, approx=True)
            else:
                p = p / denom

            head = jnp.dot(p.astype(jnp.bfloat16), vh,
                           preferred_element_type=jnp.float32)            # (S, hd)
            # Fused output projection for this head (row-slice of W_out^T is
            # sublane-aligned: c0 is a multiple of hd = 16).
            acc = acc + jnp.dot(head.astype(jnp.bfloat16),
                                opwt_ref[c0:c0 + hd, :],
                                preferred_element_type=jnp.float32)       # (S, E)
        batch_attn.append(acc)
    attn = jnp.concatenate(batch_attn, axis=0)       # (B*S, E) f32, sublane concat

    gamma = lnw_ref[...]                             # (1, E)
    beta = lnb_ref[...]                              # (1, E)

    def layer_norm(z):
        # Centered two-pass LayerNorm (PyTorch semantics: biased var, eps = 1e-5),
        # gamma/beta fused into one scale + one shift.
        mu = jnp.mean(z, axis=-1, keepdims=True)
        zc = z - mu
        var = jnp.mean(zc * zc, axis=-1, keepdims=True)
        return zc * (gamma * jax.lax.rsqrt(var + 1e-5)) + beta

    # ---- residual + norm ----
    x1 = layer_norm(x + attn)

    # ---- feed-forward: Linear -> ReLU -> Linear (bf16 operands, f32 acc) ----
    h1 = jnp.maximum(
        jnp.dot(x1.astype(jnp.bfloat16), w1t_ref[...],
                preferred_element_type=jnp.float32) + b1_ref[...], 0.0)
    ff = jnp.dot(h1.astype(jnp.bfloat16), w2t_ref[...],
                 preferred_element_type=jnp.float32) + b2_ref[...]

    # ---- residual + norm (same LayerNorm parameters, as in the module) ----
    o_ref[...] = layer_norm(x1 + ff)


# ----------------------------------------------------------------------------
# One-time weight preparation (hoisted out of the per-call path).
# ----------------------------------------------------------------------------
def prepare_params(params, *, num_heads=2):
    E = params["ln_w"].shape[0]
    hd = E // num_heads
    assert num_heads * hd == E, "embedding_dim must be divisible by num_heads"
    assert params["in_proj_w"].shape == (3 * E, E)
    assert params["out_proj_w"].shape == (E, E)

    scale = hd ** -0.5
    ipw, ipb = params["in_proj_w"], params["in_proj_b"]
    qw, kw, vw = ipw[:E] * scale, ipw[E:2 * E], ipw[2 * E:]
    qb, kb, vb = ipb[:E] * scale, ipb[E:2 * E], ipb[2 * E:]

    prepped = dict(
        qwt=qw.T.astype(jnp.bfloat16),                   # (E, E)
        kwt=kw.T.astype(jnp.bfloat16),                   # (E, E)
        vwt=vw.T.astype(jnp.bfloat16),                   # (E, E)
        qb=qb[None, :], kb=kb[None, :], vb=vb[None, :],  # (1, E) f32
        opwt=params["out_proj_w"].T.astype(jnp.bfloat16),  # (E, E)
        opb=params["out_proj_b"][None, :],               # (1, E) f32
        lnw=params["ln_w"][None, :],                     # (1, E) f32
        lnb=params["ln_b"][None, :],                     # (1, E) f32
        w1t=params["w1"].T.astype(jnp.bfloat16),         # (E, H)
        b1=params["b1"][None, :],                        # (1, H) f32
        w2t=params["w2"].T.astype(jnp.bfloat16),         # (H, E)
        b2=params["b2"][None, :],                        # (1, E) f32
    )
    return jax.tree_util.tree_map(jnp.asarray, prepped)


# ----------------------------------------------------------------------------
# Forward wrapper (per-call path: just layout plumbing + one pallas_call).
# ----------------------------------------------------------------------------
def encoder_forward(inputs_sbe, prepped, *, num_heads=2):
    """inputs_sbe: (S, B, E) float32, seq-first like PyTorch's MultiheadAttention."""
    S, B, E = inputs_sbe.shape
    hd = E // num_heads
    assert num_heads * hd == E, "embedding_dim must be divisible by num_heads"
    assert prepped["qwt"].shape == (E, E), "prepared params do not match input E"
    M = B * S

    # Fuse batch into the token dimension: (S, B, E) -> (B, S, E) -> (B*S, E)
    x = jnp.transpose(inputs_sbe, (1, 0, 2)).reshape(M, E)

    kernel = functools.partial(encoder_kernel, batch=B, seq=S, num_heads=num_heads)

    # Single ungridded invocation: at B*S = 16 tokens all operands are whole-array
    # VMEM blocks for the one step; nothing is worth tiling or double-buffering.
    out = pl.pallas_call(
        kernel,
        out_shape=jax.ShapeDtypeStruct((M, E), jnp.float32),
    )(x,
      prepped["qwt"], prepped["kwt"], prepped["vwt"],
      prepped["qb"], prepped["kb"], prepped["vb"],
      prepped["opwt"], prepped["opb"], prepped["lnw"], prepped["lnb"],
      prepped["w1t"], prepped["b1"], prepped["w2t"], prepped["b2"])

    # (B*S, E) -> (B, S, E) -> back to PyTorch's (S, B, E)
    return out.reshape(B, S, E).transpose(1, 0, 2)


# ----------------------------------------------------------------------------
# Pure-JAX reference (mirrors torch semantics, full f32) for a correctness check.
# ----------------------------------------------------------------------------
def reference_forward(inputs_sbe, params, *, num_heads=2):
    x = jnp.transpose(inputs_sbe, (1, 0, 2))          # (B, S, E)
    B, S, E = x.shape
    hd = E // num_heads
    qkv = x @ params["in_proj_w"].T + params["in_proj_b"]
    q, k, v = qkv[..., :E], qkv[..., E:2 * E], qkv[..., 2 * E:]

    def split_heads(t):
        return t.reshape(B, S, num_heads, hd).transpose(0, 2, 1, 3)

    qh, kh, vh = split_heads(q), split_heads(k), split_heads(v)
    s = jnp.einsum("bhqd,bhkd->bhqk", qh, kh) * (hd ** -0.5)
    p = jax.nn.softmax(s, axis=-1)
    o = jnp.einsum("bhqk,bhkd->bhqd", p, vh).transpose(0, 2, 1, 3).reshape(B, S, E)
    attn = o @ params["out_proj_w"].T + params["out_proj_b"]

    def ln(z):
        mu = z.mean(-1, keepdims=True)
        var = ((z - mu) ** 2).mean(-1, keepdims=True)
        return (z - mu) / jnp.sqrt(var + 1e-5) * params["ln_w"] + params["ln_b"]

    x1 = ln(x + attn)
    ffo = jnp.maximum(x1 @ params["w1"].T + params["b1"], 0.0) @ params["w2"].T + params["b2"]
    x2 = ln(x1 + ffo)
    return jnp.transpose(x2, (1, 0, 2))


# ----------------------------------------------------------------------------
# Deterministic parameter init (shapes from EncoderModule.__init__).
# ----------------------------------------------------------------------------
def init_params(key, embedding_dim, hidden_dim):
    E, H = embedding_dim, hidden_dim
    ks = jax.random.split(key, 8)

    def u(k, shape, scale=0.2):
        return jax.random.uniform(k, shape, jnp.float32, -scale, scale)

    return dict(
        in_proj_w=u(ks[0], (3 * E, E)),     # nn.MultiheadAttention in_proj_weight
        in_proj_b=u(ks[1], (3 * E,)),
        out_proj_w=u(ks[2], (E, E)),
        out_proj_b=u(ks[3], (E,)),
        ln_w=jnp.ones((E,), jnp.float32),   # nn.LayerNorm weight/bias
        ln_b=jnp.zeros((E,), jnp.float32),
        w1=u(ks[4], (H, E)),                # Linear(E, H)
        b1=u(ks[5], (H,)),
        w2=u(ks[6], (E, H)),                # Linear(H, E)
        b2=u(ks[7], (E,)),
    )


if __name__ == "__main__":
    S, B, E = 8, 2, 32          # seq_len, batch, embedding_dim
    NUM_HEADS, HIDDEN = 2, 32

    root = jax.random.PRNGKey(0)
    k_in, k_par = jax.random.split(root)
    inputs = jax.random.normal(k_in, (S, B, E), jnp.float32)   # PyTorch (S, B, E) layout
    params = init_params(k_par, E, HIDDEN)

    # One-time weight prep (split/scale/transpose/bf16-cast), then a jitted forward
    # whose per-call work is only activation layout plumbing + the pallas_call.
    prepped = prepare_params(params, num_heads=NUM_HEADS)
    fwd = jax.jit(functools.partial(encoder_forward, num_heads=NUM_HEADS))

    out = fwd(inputs, prepped)
    out = jax.block_until_ready(out)

    ref = reference_forward(inputs, params, num_heads=NUM_HEADS)
    assert out.shape == (S, B, E)
    # bf16 MXU operands + approx softmax reciprocal vs. an all-f32 reference.
    assert jnp.allclose(out, ref, rtol=2e-2, atol=2e-2), "mismatch vs reference"

    print("KERNEL_OK")
</pallas_src>

<mosaic_0001>
module attributes {stable_mosaic.version = 11 : i64} {
  func.func @encoder_kernel(%arg0: memref<16x32xf32, #tpu.memory_space<vmem>>, %arg1: memref<32x32xbf16, #tpu.memory_space<vmem>>, %arg2: memref<32x32xbf16, #tpu.memory_space<vmem>>, %arg3: memref<32x32xbf16, #tpu.memory_space<vmem>>, %arg4: memref<1x32xf32, #tpu.memory_space<vmem>>, %arg5: memref<1x32xf32, #tpu.memory_space<vmem>>, %arg6: memref<1x32xf32, #tpu.memory_space<vmem>>, %arg7: memref<32x32xbf16, #tpu.memory_space<vmem>>, %arg8: memref<1x32xf32, #tpu.memory_space<vmem>>, %arg9: memref<1x32xf32, #tpu.memory_space<vmem>>, %arg10: memref<1x32xf32, #tpu.memory_space<vmem>>, %arg11: memref<32x32xbf16, #tpu.memory_space<vmem>>, %arg12: memref<1x32xf32, #tpu.memory_space<vmem>>, %arg13: memref<32x32xbf16, #tpu.memory_space<vmem>>, %arg14: memref<1x32xf32, #tpu.memory_space<vmem>>, %arg15: memref<16x32xf32, #tpu.memory_space<vmem>>) attributes {dimension_semantics = [], scalar_prefetch = 0 : i64, scratch_operands = 0 : i64, tpu.core_type = #tpu.core_type<tc>} {
    %c0 = arith.constant 0 : index
    %c0_0 = arith.constant 0 : index
    %0 = vector.load %arg0[%c0, %c0_0] : memref<16x32xf32, #tpu.memory_space<vmem>>, vector<16x32xf32>
    %1 = arith.truncf %0 : vector<16x32xf32> to vector<16x32xbf16>
    %c0_1 = arith.constant 0 : index
    %c0_2 = arith.constant 0 : index
    %2 = vector.load %arg1[%c0_1, %c0_2] : memref<32x32xbf16, #tpu.memory_space<vmem>>, vector<32x32xbf16>
    %cst = arith.constant dense<0.000000e+00> : vector<16x32xf32>
    %3 = tpu.matmul %1, %2, %cst {dimension_numbers = #tpu.dot_dimension_numbers<[1], [0], [0], [1], [0, 0, 1, 1], [], []>} : vector<16x32xbf16>, vector<32x32xbf16>, vector<16x32xf32> -> vector<16x32xf32>
    %c0_3 = arith.constant 0 : index
    %c0_4 = arith.constant 0 : index
    %4 = vector.load %arg4[%c0_3, %c0_4] : memref<1x32xf32, #tpu.memory_space<vmem>>, vector<1x32xf32>
    %5 = vector.broadcast %4 : vector<1x32xf32> to vector<16x32xf32>
    %6 = arith.addf %3, %5 : vector<16x32xf32>
    %c0_5 = arith.constant 0 : index
    %c0_6 = arith.constant 0 : index
    %7 = vector.load %arg2[%c0_5, %c0_6] : memref<32x32xbf16, #tpu.memory_space<vmem>>, vector<32x32xbf16>
    %cst_7 = arith.constant dense<0.000000e+00> : vector<16x32xf32>
    %8 = tpu.matmul %1, %7, %cst_7 {dimension_numbers = #tpu.dot_dimension_numbers<[1], [0], [0], [1], [0, 0, 1, 1], [], []>} : vector<16x32xbf16>, vector<32x32xbf16>, vector<16x32xf32> -> vector<16x32xf32>
    %c0_8 = arith.constant 0 : index
    %c0_9 = arith.constant 0 : index
    %9 = vector.load %arg5[%c0_8, %c0_9] : memref<1x32xf32, #tpu.memory_space<vmem>>, vector<1x32xf32>
    %10 = vector.broadcast %9 : vector<1x32xf32> to vector<16x32xf32>
    %11 = arith.addf %8, %10 : vector<16x32xf32>
    %c0_10 = arith.constant 0 : index
    %c0_11 = arith.constant 0 : index
    %12 = vector.load %arg3[%c0_10, %c0_11] : memref<32x32xbf16, #tpu.memory_space<vmem>>, vector<32x32xbf16>
    %cst_12 = arith.constant dense<0.000000e+00> : vector<16x32xf32>
    %13 = tpu.matmul %1, %12, %cst_12 {dimension_numbers = #tpu.dot_dimension_numbers<[1], [0], [0], [1], [0, 0, 1, 1], [], []>} : vector<16x32xbf16>, vector<32x32xbf16>, vector<16x32xf32> -> vector<16x32xf32>
    %c0_13 = arith.constant 0 : index
    %c0_14 = arith.constant 0 : index
    %14 = vector.load %arg6[%c0_13, %c0_14] : memref<1x32xf32, #tpu.memory_space<vmem>>, vector<1x32xf32>
    %15 = vector.broadcast %14 : vector<1x32xf32> to vector<16x32xf32>
    %16 = arith.addf %13, %15 : vector<16x32xf32>
    %c0_15 = arith.constant 0 : index
    %c0_16 = arith.constant 0 : index
    %17 = vector.load %arg8[%c0_15, %c0_16] : memref<1x32xf32, #tpu.memory_space<vmem>>, vector<1x32xf32>
    %18 = vector.shape_cast %17 : vector<1x32xf32> to vector<1x32xf32>
    %19 = vector.broadcast %18 : vector<1x32xf32> to vector<8x32xf32>
    %20 = vector.extract_strided_slice %6 {offsets = [0, 0], sizes = [8, 16], strides = [1, 1]} : vector<16x32xf32> to vector<8x16xf32>
    %21 = arith.truncf %20 : vector<8x16xf32> to vector<8x16xbf16>
    %22 = vector.extract_strided_slice %11 {offsets = [0, 0], sizes = [8, 16], strides = [1, 1]} : vector<16x32xf32> to vector<8x16xf32>
    %23 = arith.truncf %22 : vector<8x16xf32> to vector<8x16xbf16>
    %24 = vector.extract_strided_slice %16 {offsets = [0, 0], sizes = [8, 16], strides = [1, 1]} : vector<16x32xf32> to vector<8x16xf32>
    %25 = arith.truncf %24 : vector<8x16xf32> to vector<8x16xbf16>
    %cst_17 = arith.constant dense<0.000000e+00> : vector<8x8xf32>
    %26 = tpu.matmul %21, %23, %cst_17 {dimension_numbers = #tpu.dot_dimension_numbers<[1], [1], [0], [0], [0, 0, 1, 0], [], []>} : vector<8x16xbf16>, vector<8x16xbf16>, vector<8x8xf32> -> vector<8x8xf32>
    %cst_18 = arith.constant dense<0xFF800000> : vector<8xf32>
    %27 = vector.multi_reduction <maximumf>, %26, %cst_18 [1] : vector<8x8xf32> to vector<8xf32>
    %28 = vector.shape_cast %27 : vector<8xf32> to vector<8x1xf32>
    %29 = vector.broadcast %28 : vector<8x1xf32> to vector<8x8xf32>
    %30 = arith.subf %26, %29 : vector<8x8xf32>
    %31 = math.exp %30 : vector<8x8xf32>
    %cst_19 = arith.constant dense<0.000000e+00> : vector<8xf32>
    %32 = vector.multi_reduction <add>, %31, %cst_19 [1] : vector<8x8xf32> to vector<8xf32>
    %33 = vector.shape_cast %32 : vector<8xf32> to vector<8x1xf32>
    %34 = tpu.reciprocal %33 {approx = true} : vector<8x1xf32> -> vector<8x1xf32>
    %35 = vector.broadcast %34 : vector<8x1xf32> to vector<8x8xf32>
    %36 = arith.mulf %31, %35 : vector<8x8xf32>
    %37 = arith.truncf %36 : vector<8x8xf32> to vector<8x8xbf16>
    %cst_20 = arith.constant dense<0.000000e+00> : vector<8x16xf32>
    %38 = tpu.matmul %37, %25, %cst_20 {dimension_numbers = #tpu.dot_dimension_numbers<[1], [0], [0], [1], [0, 0, 1, 1], [], []>} : vector<8x8xbf16>, vector<8x16xbf16>, vector<8x16xf32> -> vector<8x16xf32>
    %39 = arith.truncf %38 : vector<8x16xf32> to vector<8x16xbf16>
    %c0_21 = arith.constant 0 : index
    %c0_22 = arith.constant 0 : index
    %40 = vector.load %arg7[%c0_21, %c0_22] : memref<32x32xbf16, #tpu.memory_space<vmem>>, vector<16x32xbf16>
    %cst_23 = arith.constant dense<0.000000e+00> : vector<8x32xf32>
    %41 = tpu.matmul %39, %40, %cst_23 {dimension_numbers = #tpu.dot_dimension_numbers<[1], [0], [0], [1], [0, 0, 1, 1], [], []>} : vector<8x16xbf16>, vector<16x32xbf16>, vector<8x32xf32> -> vector<8x32xf32>
    %42 = arith.addf %19, %41 : vector<8x32xf32>
    %43 = vector.extract_strided_slice %6 {offsets = [0, 16], sizes = [8, 16], strides = [1, 1]} : vector<16x32xf32> to vector<8x16xf32>
    %44 = arith.truncf %43 : vector<8x16xf32> to vector<8x16xbf16>
    %45 = vector.extract_strided_slice %11 {offsets = [0, 16], sizes = [8, 16], strides = [1, 1]} : vector<16x32xf32> to vector<8x16xf32>
    %46 = arith.truncf %45 : vector<8x16xf32> to vector<8x16xbf16>
    %47 = vector.extract_strided_slice %16 {offsets = [0, 16], sizes = [8, 16], strides = [1, 1]} : vector<16x32xf32> to vector<8x16xf32>
    %48 = arith.truncf %47 : vector<8x16xf32> to vector<8x16xbf16>
    %cst_24 = arith.constant dense<0.000000e+00> : vector<8x8xf32>
    %49 = tpu.matmul %44, %46, %cst_24 {dimension_numbers = #tpu.dot_dimension_numbers<[1], [1], [0], [0], [0, 0, 1, 0], [], []>} : vector<8x16xbf16>, vector<8x16xbf16>, vector<8x8xf32> -> vector<8x8xf32>
    %cst_25 = arith.constant dense<0xFF800000> : vector<8xf32>
    %50 = vector.multi_reduction <maximumf>, %49, %cst_25 [1] : vector<8x8xf32> to vector<8xf32>
    %51 = vector.shape_cast %50 : vector<8xf32> to vector<8x1xf32>
    %52 = vector.broadcast %51 : vector<8x1xf32> to vector<8x8xf32>
    %53 = arith.subf %49, %52 : vector<8x8xf32>
    %54 = math.exp %53 : vector<8x8xf32>
    %cst_26 = arith.constant dense<0.000000e+00> : vector<8xf32>
    %55 = vector.multi_reduction <add>, %54, %cst_26 [1] : vector<8x8xf32> to vector<8xf32>
    %56 = vector.shape_cast %55 : vector<8xf32> to vector<8x1xf32>
    %57 = tpu.reciprocal %56 {approx = true} : vector<8x1xf32> -> vector<8x1xf32>
    %58 = vector.broadcast %57 : vector<8x1xf32> to vector<8x8xf32>
    %59 = arith.mulf %54, %58 : vector<8x8xf32>
    %60 = arith.truncf %59 : vector<8x8xf32> to vector<8x8xbf16>
    %cst_27 = arith.constant dense<0.000000e+00> : vector<8x16xf32>
    %61 = tpu.matmul %60, %48, %cst_27 {dimension_numbers = #tpu.dot_dimension_numbers<[1], [0], [0], [1], [0, 0, 1, 1], [], []>} : vector<8x8xbf16>, vector<8x16xbf16>, vector<8x16xf32> -> vector<8x16xf32>
    %62 = arith.truncf %61 : vector<8x16xf32> to vector<8x16xbf16>
    %c16 = arith.constant 16 : index
    %c0_28 = arith.constant 0 : index
    %63 = vector.load %arg7[%c16, %c0_28] : memref<32x32xbf16, #tpu.memory_space<vmem>>, vector<16x32xbf16>
    %cst_29 = arith.constant dense<0.000000e+00> : vector<8x32xf32>
    %64 = tpu.matmul %62, %63, %cst_29 {dimension_numbers = #tpu.dot_dimension_numbers<[1], [0], [0], [1], [0, 0, 1, 1], [], []>} : vector<8x16xbf16>, vector<16x32xbf16>, vector<8x32xf32> -> vector<8x32xf32>
    %65 = arith.addf %42, %64 : vector<8x32xf32>
    %66 = vector.shape_cast %17 : vector<1x32xf32> to vector<1x32xf32>
    %67 = vector.broadcast %66 : vector<1x32xf32> to vector<8x32xf32>
    %68 = vector.extract_strided_slice %6 {offsets = [8, 0], sizes = [8, 16], strides = [1, 1]} : vector<16x32xf32> to vector<8x16xf32>
    %69 = arith.truncf %68 : vector<8x16xf32> to vector<8x16xbf16>
    %70 = vector.extract_strided_slice %11 {offsets = [8, 0], sizes = [8, 16], strides = [1, 1]} : vector<16x32xf32> to vector<8x16xf32>
    %71 = arith.truncf %70 : vector<8x16xf32> to vector<8x16xbf16>
    %72 = vector.extract_strided_slice %16 {offsets = [8, 0], sizes = [8, 16], strides = [1, 1]} : vector<16x32xf32> to vector<8x16xf32>
    %73 = arith.truncf %72 : vector<8x16xf32> to vector<8x16xbf16>
    %cst_30 = arith.constant dense<0.000000e+00> : vector<8x8xf32>
    %74 = tpu.matmul %69, %71, %cst_30 {dimension_numbers = #tpu.dot_dimension_numbers<[1], [1], [0], [0], [0, 0, 1, 0], [], []>} : vector<8x16xbf16>, vector<8x16xbf16>, vector<8x8xf32> -> vector<8x8xf32>
    %cst_31 = arith.constant dense<0xFF800000> : vector<8xf32>
    %75 = vector.multi_reduction <maximumf>, %74, %cst_31 [1] : vector<8x8xf32> to vector<8xf32>
    %76 = vector.shape_cast %75 : vector<8xf32> to vector<8x1xf32>
    %77 = vector.broadcast %76 : vector<8x1xf32> to vector<8x8xf32>
    %78 = arith.subf %74, %77 : vector<8x8xf32>
    %79 = math.exp %78 : vector<8x8xf32>
    %cst_32 = arith.constant dense<0.000000e+00> : vector<8xf32>
    %80 = vector.multi_reduction <add>, %79, %cst_32 [1] : vector<8x8xf32> to vector<8xf32>
    %81 = vector.shape_cast %80 : vector<8xf32> to vector<8x1xf32>
    %82 = tpu.reciprocal %81 {approx = true} : vector<8x1xf32> -> vector<8x1xf32>
    %83 = vector.broadcast %82 : vector<8x1xf32> to vector<8x8xf32>
    %84 = arith.mulf %79, %83 : vector<8x8xf32>
    %85 = arith.truncf %84 : vector<8x8xf32> to vector<8x8xbf16>
    %cst_33 = arith.constant dense<0.000000e+00> : vector<8x16xf32>
    %86 = tpu.matmul %85, %73, %cst_33 {dimension_numbers = #tpu.dot_dimension_numbers<[1], [0], [0], [1], [0, 0, 1, 1], [], []>} : vector<8x8xbf16>, vector<8x16xbf16>, vector<8x16xf32> -> vector<8x16xf32>
    %87 = arith.truncf %86 : vector<8x16xf32> to vector<8x16xbf16>
    %c0_34 = arith.constant 0 : index
    %c0_35 = arith.constant 0 : index
    %88 = vector.load %arg7[%c0_34, %c0_35] : memref<32x32xbf16, #tpu.memory_space<vmem>>, vector<16x32xbf16>
    %cst_36 = arith.constant dense<0.000000e+00> : vector<8x32xf32>
    %89 = tpu.matmul %87, %88, %cst_36 {dimension_numbers = #tpu.dot_dimension_numbers<[1], [0], [0], [1], [0, 0, 1, 1], [], []>} : vector<8x16xbf16>, vector<16x32xbf16>, vector<8x32xf32> -> vector<8x32xf32>
    %90 = arith.addf %67, %89 : vector<8x32xf32>
    %91 = vector.extract_strided_slice %6 {offsets = [8, 16], sizes = [8, 16], strides = [1, 1]} : vector<16x32xf32> to vector<8x16xf32>
    %92 = arith.truncf %91 : vector<8x16xf32> to vector<8x16xbf16>
    %93 = vector.extract_strided_slice %11 {offsets = [8, 16], sizes = [8, 16], strides = [1, 1]} : vector<16x32xf32> to vector<8x16xf32>
    %94 = arith.truncf %93 : vector<8x16xf32> to vector<8x16xbf16>
    %95 = vector.extract_strided_slice %16 {offsets = [8, 16], sizes = [8, 16], strides = [1, 1]} : vector<16x32xf32> to vector<8x16xf32>
    %96 = arith.truncf %95 : vector<8x16xf32> to vector<8x16xbf16>
    %cst_37 = arith.constant dense<0.000000e+00> : vector<8x8xf32>
    %97 = tpu.matmul %92, %94, %cst_37 {dimension_numbers = #tpu.dot_dimension_numbers<[1], [1], [0], [0], [0, 0, 1, 0], [], []>} : vector<8x16xbf16>, vector<8x16xbf16>, vector<8x8xf32> -> vector<8x8xf32>
    %cst_38 = arith.constant dense<0xFF800000> : vector<8xf32>
    %98 = vector.multi_reduction <maximumf>, %97, %cst_38 [1] : vector<8x8xf32> to vector<8xf32>
    %99 = vector.shape_cast %98 : vector<8xf32> to vector<8x1xf32>
    %100 = vector.broadcast %99 : vector<8x1xf32> to vector<8x8xf32>
    %101 = arith.subf %97, %100 : vector<8x8xf32>
    %102 = math.exp %101 : vector<8x8xf32>
    %cst_39 = arith.constant dense<0.000000e+00> : vector<8xf32>
    %103 = vector.multi_reduction <add>, %102, %cst_39 [1] : vector<8x8xf32> to vector<8xf32>
    %104 = vector.shape_cast %103 : vector<8xf32> to vector<8x1xf32>
    %105 = tpu.reciprocal %104 {approx = true} : vector<8x1xf32> -> vector<8x1xf32>
    %106 = vector.broadcast %105 : vector<8x1xf32> to vector<8x8xf32>
    %107 = arith.mulf %102, %106 : vector<8x8xf32>
    %108 = arith.truncf %107 : vector<8x8xf32> to vector<8x8xbf16>
    %cst_40 = arith.constant dense<0.000000e+00> : vector<8x16xf32>
    %109 = tpu.matmul %108, %96, %cst_40 {dimension_numbers = #tpu.dot_dimension_numbers<[1], [0], [0], [1], [0, 0, 1, 1], [], []>} : vector<8x8xbf16>, vector<8x16xbf16>, vector<8x16xf32> -> vector<8x16xf32>
    %110 = arith.truncf %109 : vector<8x16xf32> to vector<8x16xbf16>
    %c16_41 = arith.constant 16 : index
    %c0_42 = arith.constant 0 : index
    %111 = vector.load %arg7[%c16_41, %c0_42] : memref<32x32xbf16, #tpu.memory_space<vmem>>, vector<16x32xbf16>
    %cst_43 = arith.constant dense<0.000000e+00> : vector<8x32xf32>
    %112 = tpu.matmul %110, %111, %cst_43 {dimension_numbers = #tpu.dot_dimension_numbers<[1], [0], [0], [1], [0, 0, 1, 1], [], []>} : vector<8x16xbf16>, vector<16x32xbf16>, vector<8x32xf32> -> vector<8x32xf32>
    %113 = arith.addf %90, %112 : vector<8x32xf32>
    %114 = tpu.concatenate %65, %113 in 0 : vector<8x32xf32>, vector<8x32xf32> -> vector<16x32xf32>
    %c0_44 = arith.constant 0 : index
    %c0_45 = arith.constant 0 : index
    %115 = vector.load %arg9[%c0_44, %c0_45] : memref<1x32xf32, #tpu.memory_space<vmem>>, vector<1x32xf32>
    %c0_46 = arith.constant 0 : index
    %c0_47 = arith.constant 0 : index
    %116 = vector.load %arg10[%c0_46, %c0_47] : memref<1x32xf32, #tpu.memory_space<vmem>>, vector<1x32xf32>
    %117 = arith.addf %0, %114 : vector<16x32xf32>
    %cst_48 = arith.constant dense<0.000000e+00> : vector<16xf32>
    %118 = vector.multi_reduction <add>, %117, %cst_48 [1] : vector<16x32xf32> to vector<16xf32>
    %119 = vector.shape_cast %118 : vector<16xf32> to vector<16x1xf32>
    %cst_49 = arith.constant 3.200000e+01 : f32
    %120 = vector.broadcast %cst_49 : f32 to vector<16x1xf32>
    %121 = arith.divf %119, %120 : vector<16x1xf32>
    %122 = vector.broadcast %121 : vector<16x1xf32> to vector<16x32xf32>
    %123 = arith.subf %117, %122 : vector<16x32xf32>
    %124 = arith.mulf %123, %123 : vector<16x32xf32>
    %cst_50 = arith.constant dense<0.000000e+00> : vector<16xf32>
    %125 = vector.multi_reduction <add>, %124, %cst_50 [1] : vector<16x32xf32> to vector<16xf32>
    %126 = vector.shape_cast %125 : vector<16xf32> to vector<16x1xf32>
    %cst_51 = arith.constant 3.200000e+01 : f32
    %127 = vector.broadcast %cst_51 : f32 to vector<16x1xf32>
    %128 = arith.divf %126, %127 : vector<16x1xf32>
    %cst_52 = arith.constant 9.99999974E-6 : f32
    %129 = vector.broadcast %cst_52 : f32 to vector<16x1xf32>
    %130 = arith.addf %128, %129 : vector<16x1xf32>
    %131 = math.rsqrt %130 : vector<16x1xf32>
    %132 = vector.broadcast %115 : vector<1x32xf32> to vector<16x32xf32>
    %133 = vector.broadcast %131 : vector<16x1xf32> to vector<16x32xf32>
    %134 = arith.mulf %132, %133 : vector<16x32xf32>
    %135 = arith.mulf %123, %134 : vector<16x32xf32>
    %136 = vector.broadcast %116 : vector<1x32xf32> to vector<16x32xf32>
    %137 = arith.addf %135, %136 : vector<16x32xf32>
    %138 = arith.truncf %137 : vector<16x32xf32> to vector<16x32xbf16>
    %c0_53 = arith.constant 0 : index
    %c0_54 = arith.constant 0 : index
    %139 = vector.load %arg11[%c0_53, %c0_54] : memref<32x32xbf16, #tpu.memory_space<vmem>>, vector<32x32xbf16>
    %cst_55 = arith.constant dense<0.000000e+00> : vector<16x32xf32>
    %140 = tpu.matmul %138, %139, %cst_55 {dimension_numbers = #tpu.dot_dimension_numbers<[1], [0], [0], [1], [0, 0, 1, 1], [], []>} : vector<16x32xbf16>, vector<32x32xbf16>, vector<16x32xf32> -> vector<16x32xf32>
    %c0_56 = arith.constant 0 : index
    %c0_57 = arith.constant 0 : index
    %141 = vector.load %arg12[%c0_56, %c0_57] : memref<1x32xf32, #tpu.memory_space<vmem>>, vector<1x32xf32>
    %142 = vector.broadcast %141 : vector<1x32xf32> to vector<16x32xf32>
    %143 = arith.addf %140, %142 : vector<16x32xf32>
    %cst_58 = arith.constant 0.000000e+00 : f32
    %144 = vector.broadcast %cst_58 : f32 to vector<16x32xf32>
    %145 = arith.maximumf %143, %144 : vector<16x32xf32>
    %146 = arith.truncf %145 : vector<16x32xf32> to vector<16x32xbf16>
    %c0_59 = arith.constant 0 : index
    %c0_60 = arith.constant 0 : index
    %147 = vector.load %arg13[%c0_59, %c0_60] : memref<32x32xbf16, #tpu.memory_space<vmem>>, vector<32x32xbf16>
    %cst_61 = arith.constant dense<0.000000e+00> : vector<16x32xf32>
    %148 = tpu.matmul %146, %147, %cst_61 {dimension_numbers = #tpu.dot_dimension_numbers<[1], [0], [0], [1], [0, 0, 1, 1], [], []>} : vector<16x32xbf16>, vector<32x32xbf16>, vector<16x32xf32> -> vector<16x32xf32>
    %c0_62 = arith.constant 0 : index
    %c0_63 = arith.constant 0 : index
    %149 = vector.load %arg14[%c0_62, %c0_63] : memref<1x32xf32, #tpu.memory_space<vmem>>, vector<1x32xf32>
    %150 = vector.broadcast %149 : vector<1x32xf32> to vector<16x32xf32>
    %151 = arith.addf %148, %150 : vector<16x32xf32>
    %152 = arith.addf %137, %151 : vector<16x32xf32>
    %cst_64 = arith.constant dense<0.000000e+00> : vector<16xf32>
    %153 = vector.multi_reduction <add>, %152, %cst_64 [1] : vector<16x32xf32> to vector<16xf32>
    %154 = vector.shape_cast %153 : vector<16xf32> to vector<16x1xf32>
    %cst_65 = arith.constant 3.200000e+01 : f32
    %155 = vector.broadcast %cst_65 : f32 to vector<16x1xf32>
    %156 = arith.divf %154, %155 : vector<16x1xf32>
    %157 = vector.broadcast %156 : vector<16x1xf32> to vector<16x32xf32>
    %158 = arith.subf %152, %157 : vector<16x32xf32>
    %159 = arith.mulf %158, %158 : vector<16x32xf32>
    %cst_66 = arith.constant dense<0.000000e+00> : vector<16xf32>
    %160 = vector.multi_reduction <add>, %159, %cst_66 [1] : vector<16x32xf32> to vector<16xf32>
    %161 = vector.shape_cast %160 : vector<16xf32> to vector<16x1xf32>
    %cst_67 = arith.constant 3.200000e+01 : f32
    %162 = vector.broadcast %cst_67 : f32 to vector<16x1xf32>
    %163 = arith.divf %161, %162 : vector<16x1xf32>
    %cst_68 = arith.constant 9.99999974E-6 : f32
    %164 = vector.broadcast %cst_68 : f32 to vector<16x1xf32>
    %165 = arith.addf %163, %164 : vector<16x1xf32>
    %166 = math.rsqrt %165 : vector<16x1xf32>
    %167 = vector.broadcast %115 : vector<1x32xf32> to vector<16x32xf32>
    %168 = vector.broadcast %166 : vector<16x1xf32> to vector<16x32xf32>
    %169 = arith.mulf %167, %168 : vector<16x32xf32>
    %170 = arith.mulf %158, %169 : vector<16x32xf32>
    %171 = vector.broadcast %116 : vector<1x32xf32> to vector<16x32xf32>
    %172 = arith.addf %170, %171 : vector<16x32xf32>
    %c0_69 = arith.constant 0 : index
    %c0_70 = arith.constant 0 : index
    %173 = vector.load %arg15[%c0_69, %c0_70] : memref<16x32xf32, #tpu.memory_space<vmem>>, vector<16x32xf32>
    tpu.vector_store %arg15[%c0_69, %c0_70], %172 {strides = array<i32>} : memref<16x32xf32, #tpu.memory_space<vmem>>, vector<16x32xf32>,
    return
  }
}

</mosaic_0001>

<bundles_post_ra>
// kernel: encoder_forward.1
= control target key start
LH: loop header
LB: loop body
LE: loop exit
PB: predicated region body
PF: predicated region fallthrough
CT: control target
= control target key end

     0   :  { %20 = vsyncpa [#allocation3], 0  ;;  %s2024_s0 = inlined_call_operand.vmem [shape: f32[16,32], index: 0, kind: input, shape index: {}]   ;;  %s2025_s1 = inlined_call_operand.vmem [shape: bf16[32,32], index: 1, kind: input, shape index: {}]   ;;  %s2026_s2 = inlined_call_operand.vmem [shape: bf16[32,32], index: 2, kind: input, shape index: {}]   ;;  %s2027_s3 = inlined_call_operand.vmem [shape: bf16[32,32], index: 3, kind: input, shape index: {}]   ;;  %s2028_s4 = inlined_call_operand.vmem [shape: f32[1,32], index: 4, kind: input, shape index: {}]   ;;  %s2029_s5 = inlined_call_operand.hbm [shape: f32[1,32], index: 5, kind: input, shape index: {}]   ;;  %s2030_s6 = inlined_call_operand.hbm [shape: f32[1,32], index: 6, kind: input, shape index: {}]   ;;  %s2031_s7 = inlined_call_operand.vmem [shape: bf16[32,32], index: 7, kind: input, shape index: {}]   ;;  %s2032_s8 = inlined_call_operand.hbm [shape: f32[1,32], index: 8, kind: input, shape index: {}]   ;;  %s2033_s9 = inlined_call_operand.hbm [shape: f32[1,32], index: 9, kind: input, shape index: {}]   ;;  %s2034_s10 = inlined_call_operand.hbm [shape: f32[1,32], index: 10, kind: input, shape index: {}]   ;;  %s2035_s11 = inlined_call_operand.vmem [shape: bf16[32,32], index: 11, kind: input, shape index: {}]   ;;  %s2036_s12 = inlined_call_operand.hbm [shape: f32[1,32], index: 12, kind: input, shape index: {}]   ;;  %s2037_s13 = inlined_call_operand.hbm [shape: bf16[32,32], index: 13, kind: input, shape index: {}]   ;;  %s2038_s14 = inlined_call_operand.hbm [shape: f32[1,32], index: 14, kind: input, shape index: {}]   ;;  %s2039_s15 = inlined_call_operand.vmem [shape: f32[16,32], index: 15, kind: output, shape index: {}]  }
   0x1   :  { %21 = vsyncpa [#allocation5], 0 }
   0x2   :  { %22 = vsyncpa [#allocation8], 0 }
   0x3   :  { %23 = vsyncpa [#allocation11], 0 }
   0x4   :  { %24 = vsyncpa [#allocation14], 0  ;;  %s1642_s18 = smov [#allocation4]   ;;  %s1643_s20 = smov [#allocation7]  }
   0x5   :  { %s51_s19 = sshll.u32 %s1642_s18, 4  ;;  %s73_s21 = sshll.u32 %s1643_s20, 4  ;;  %s52_s19 = int_to_ptr.vmem [resolvable:$true] %s51_s19  ;;  %s74_s21 = int_to_ptr.vmem [resolvable:$true] %s73_s21 }
   0x6   :  { %s1456_s24 = scalar_lea.hbm %s2030_s6, 16 }
   0x7   :  { %p1457_p0 = scmp.ne.s32.totalorder %s2030_s6, %s1456_s24  ;;  %p1460_p1 = scmp.lt.u32.totalorder %s1456_s24, %s2030_s6 }
   0x9   :  { %p1462_p2 = pnand %p1460_p1, %p1457_p0 }
   0xb   :  { %1465 = shalt.err (!%p1462_p2)
}
   0xc   :  { %s1466_s29 = scalar_lea.vmem %s52_s19, 16  ;;  %s1470_s30 = scalar_lea.vmem %s52_s19, 32 }
   0xd   :  { %p1467_p3 = scmp.ne.s32.totalorder %s52_s19, %s1466_s29  ;;  %p1471_p4 = scmp.lt.s32.totalorder %s52_s19, %s52_s19 }
   0xe   :  { %p1472_p5 = scmp.lt.s32.totalorder %s1470_s30, %s1466_s29 }
  0x10   :  { %p1473_p6 = por %p1472_p5, %p1471_p4 }
  0x12   :  { %p1474_p7 = pnand %p1473_p6, %p1467_p3 }
  0x14   :  { %1477 = shalt.err (!%p1474_p7)
}
  0x15   :  { %54 = dma.hbm_to_vmem [thread:$0]  %s2030_s6, 16, %s52_s19, [#allocation5]  }
  0x16   :  { %s1478_s22 = scalar_lea.hbm %s2033_s9, 16 }
  0x17   :  { %p1479_p8 = scmp.ne.s32.totalorder %s2033_s9, %s1478_s22  ;;  %p1482_p9 = scmp.lt.u32.totalorder %s1478_s22, %s2033_s9 }
  0x19   :  { %p1484_p10 = pnand %p1482_p9, %p1479_p8 }
  0x1b   :  { %1487 = shalt.err (!%p1484_p10)
}
  0x1c   :  { %s1488_s27 = scalar_lea.vmem %s74_s21, 16  ;;  %s1492_s28 = scalar_lea.vmem %s74_s21, 32 }
  0x1d   :  { %p1489_p11 = scmp.ne.s32.totalorder %s74_s21, %s1488_s27  ;;  %p1493_p12 = scmp.lt.s32.totalorder %s74_s21, %s74_s21 }
  0x1e   :  { %p1494_p13 = scmp.lt.s32.totalorder %s1492_s28, %s1488_s27 }
  0x20   :  { %p1495_p0 = por %p1494_p13, %p1493_p12 }
  0x22   :  { %p1496_p1 = pnand %p1495_p0, %p1489_p11 }
  0x24   :  { %1499 = shalt.err (!%p1496_p1)
}
  0x25   :  { %76 = dma.hbm_to_vmem [thread:$0]  %s2033_s9, 16, %s74_s21, [#allocation8]  }
  0x26   :  { %s1644_s29 = smov [#allocation10]   ;;  %s1645_s16 = smov [#allocation2]  }
  0x27   :  { %s95_s30 = sshll.u32 %s1644_s29, 4  ;;  %s41_s17 = sshll.u32 %s1645_s16, 4  ;;  %s96_s30 = int_to_ptr.vmem [resolvable:$true] %s95_s30  ;;  %s42_s17 = int_to_ptr.vmem [resolvable:$true] %s41_s17 }
  0x28   :  { %s1500_s22 = scalar_lea.hbm %s2036_s12, 16 }
  0x29   :  { %p1501_p2 = scmp.ne.s32.totalorder %s2036_s12, %s1500_s22  ;;  %p1504_p3 = scmp.lt.u32.totalorder %s1500_s22, %s2036_s12 }
  0x2b   :  { %p1506_p4 = pnand %p1504_p3, %p1501_p2 }
  0x2d   :  { %1509 = shalt.err (!%p1506_p4)
}
  0x2e   :  { %s1510_s9 = scalar_lea.vmem %s96_s30, 16  ;;  %s1514_s21 = scalar_lea.vmem %s96_s30, 32 }
  0x2f   :  { %p1511_p5 = scmp.ne.s32.totalorder %s96_s30, %s1510_s9  ;;  %p1515_p6 = scmp.lt.s32.totalorder %s96_s30, %s96_s30 }
  0x30   :  { %p1516_p7 = scmp.lt.s32.totalorder %s1514_s21, %s1510_s9 }
  0x32   :  { %p1517_p8 = por %p1516_p7, %p1515_p6 }
  0x34   :  { %p1518_p9 = pnand %p1517_p8, %p1511_p5 }
  0x36   :  { %1521 = shalt.err (!%p1518_p9)
}
  0x37   :  { %98 = dma.hbm_to_vmem [thread:$0]  %s2036_s12, 16, %s96_s30, [#allocation11]  }
  0x38   :  { %s1522_s29 = scalar_lea.hbm %s2029_s5, 16 }
  0x39   :  { %p1523_p10 = scmp.ne.s32.totalorder %s2029_s5, %s1522_s29  ;;  %p1526_p11 = scmp.lt.u32.totalorder %s1522_s29, %s2029_s5 }
  0x3b   :  { %p1528_p12 = pnand %p1526_p11, %p1523_p10 }
  0x3d   :  { %1531 = shalt.err (!%p1528_p12)
}
  0x3e   :  { %s1532_s23 = scalar_lea.vmem %s42_s17, 16  ;;  %s1536_s24 = scalar_lea.vmem %s42_s17, 32 }
  0x3f   :  { %p1533_p13 = scmp.ne.s32.totalorder %s42_s17, %s1532_s23  ;;  %p1537_p0 = scmp.lt.s32.totalorder %s42_s17, %s42_s17 }
  0x40   :  { %p1538_p1 = scmp.lt.s32.totalorder %s1536_s24, %s1532_s23 }
  0x42   :  { %p1539_p2 = por %p1538_p1, %p1537_p0 }
  0x44   :  { %p1540_p3 = pnand %p1539_p2, %p1533_p13 }
  0x46   :  { %1543 = shalt.err (!%p1540_p3)
}
  0x47   :  { %44 = dma.hbm_to_vmem [thread:$0]  %s2029_s5, 16, %s42_s17, [#allocation3]  }
  0x48   :  { %s1646_s25 = smov [#allocation6]   ;;  %s1647_s9 = smov [#allocation9]  }
  0x49   :  { %s63_s26 = sshll.u32 %s1646_s25, 4  ;;  %s83_s21 = sshll.u32 %s1647_s9, 4  ;;  %s64_s26 = int_to_ptr.vmem [resolvable:$true] %s63_s26  ;;  %s84_s21 = int_to_ptr.vmem [resolvable:$true] %s83_s21 }
  0x4a   :  { %s1544_s6 = scalar_lea.hbm %s2032_s8, 16 }
  0x4b   :  { %p1545_p4 = scmp.ne.s32.totalorder %s2032_s8, %s1544_s6  ;;  %p1548_p5 = scmp.lt.u32.totalorder %s1544_s6, %s2032_s8 }
  0x4d   :  { %p1550_p6 = pnand %p1548_p5, %p1545_p4 }
  0x4f   :  { %1553 = shalt.err (!%p1550_p6)
}
  0x50   :  { %s1554_s5 = scalar_lea.vmem %s64_s26, 16  ;;  %s1558_s17 = scalar_lea.vmem %s64_s26, 32 }
  0x51   :  { %p1555_p7 = scmp.ne.s32.totalorder %s64_s26, %s1554_s5  ;;  %p1559_p8 = scmp.lt.s32.totalorder %s64_s26, %s64_s26 }
  0x52   :  { %p1560_p9 = scmp.lt.s32.totalorder %s1558_s17, %s1554_s5 }
  0x54   :  { %p1561_p10 = por %p1560_p9, %p1559_p8 }
  0x56   :  { %p1562_p11 = pnand %p1561_p10, %p1555_p7 }
  0x58   :  { %1565 = shalt.err (!%p1562_p11)
}
  0x59   :  { %66 = dma.hbm_to_vmem [thread:$0]  %s2032_s8, 16, %s64_s26, [#allocation5]  }
  0x5a   :  { %s1566_s12 = scalar_lea.hbm %s2034_s10, 16 }
  0x5b   :  { %p1567_p12 = scmp.ne.s32.totalorder %s2034_s10, %s1566_s12  ;;  %p1570_p13 = scmp.lt.u32.totalorder %s1566_s12, %s2034_s10 }
  0x5d   :  { %p1572_p0 = pnand %p1570_p13, %p1567_p12 }
  0x5f   :  { %1575 = shalt.err (!%p1572_p0)
}
  0x60   :  { %s1576_s28 = scalar_lea.vmem %s84_s21, 16  ;;  %s1580_s6 = scalar_lea.vmem %s84_s21, 32 }
  0x61   :  { %p1577_p1 = scmp.ne.s32.totalorder %s84_s21, %s1576_s28  ;;  %p1581_p2 = scmp.lt.s32.totalorder %s84_s21, %s84_s21 }
  0x62   :  { %p1582_p3 = scmp.lt.s32.totalorder %s1580_s6, %s1576_s28 }
  0x64   :  { %p1583_p4 = por %p1582_p3, %p1581_p2 }
  0x66   :  { %p1584_p5 = pnand %p1583_p4, %p1577_p1 }
  0x68   :  { %1587 = shalt.err (!%p1584_p5)
}
  0x69   :  { %86 = dma.hbm_to_vmem [thread:$0]  %s2034_s10, 16, %s84_s21, [#allocation8]  }
  0x6a   :  { %s1648_s19 = smov [#allocation12]   ;;  %s1588_s5 = scalar_lea.hbm %s2037_s13, 256 }
  0x6b   :  { %s104_s29 = sshll.u32 %s1648_s19, 4  ;;  %p1589_p6 = scmp.ne.s32.totalorder %s2037_s13, %s1588_s5  ;;  %s105_s29 = int_to_ptr.vmem [resolvable:$true] %s104_s29 }
  0x6c   :  { %p1592_p7 = scmp.lt.u32.totalorder %s1588_s5, %s2037_s13 }
  0x6e   :  { %p1594_p8 = pnand %p1592_p7, %p1589_p6 }
  0x70   :  { %1597 = shalt.err (!%p1594_p8)
}
  0x71   :  { %s1598_s24 = scalar_lea.vmem %s105_s29, 256  ;;  %p1603_p10 = scmp.lt.s32.totalorder %s105_s29, %s105_s29 }
  0x72   :  { %p1599_p9 = scmp.ne.s32.totalorder %s105_s29, %s1598_s24  ;;  %p1604_p11 = scmp.lt.s32.totalorder %s1598_s24, %s1598_s24 }
  0x74   :  { %p1605_p12 = por %p1604_p11, %p1603_p10 }
  0x76   :  { %p1606_p13 = pnand %p1605_p12, %p1599_p9 }
  0x78   :  { %1609 = shalt.err (!%p1606_p13)
}
  0x79   :  { %s1649_s10 = smov 64   ;;  %s1650_s21 = smov 4  }
  0x7a   :  { %110 = dma.hbm_to_vmem [thread:$0]  %s2037_s13, 256, %s105_s29, [#allocation11], %s1649_s10, %s1649_s10, %s1650_s21  }
  0x7b   :  { %s1651_s25 = smov [#allocation13]   ;;  %s1610_s6 = scalar_lea.hbm %s2038_s14, 16 }
  0x7c   :  { %s117_s9 = sshll.u32 %s1651_s25, 4  ;;  %p1611_p0 = scmp.ne.s32.totalorder %s2038_s14, %s1610_s6  ;;  %s118_s9 = int_to_ptr.vmem [resolvable:$true] %s117_s9 }
  0x7d   :  { %p1614_p1 = scmp.lt.u32.totalorder %s1610_s6, %s2038_s14 }
  0x7f   :  { %p1616_p2 = pnand %p1614_p1, %p1611_p0 }
  0x81   :  { %1619 = shalt.err (!%p1616_p2)
}
  0x82   :  { %s1620_s18 = scalar_lea.vmem %s118_s9, 16  ;;  %s1624_s13 = scalar_lea.vmem %s118_s9, 32 }
  0x83   :  { %p1621_p3 = scmp.ne.s32.totalorder %s118_s9, %s1620_s18  ;;  %p1625_p4 = scmp.lt.s32.totalorder %s118_s9, %s118_s9 }
  0x84   :  { %p1626_p5 = scmp.lt.s32.totalorder %s1624_s13, %s1620_s18 }
  0x86   :  { %p1627_p6 = por %p1626_p5, %p1625_p4 }
  0x88   :  { %p1628_p7 = pnand %p1627_p6, %p1621_p3 }
  0x8a   :  { %1631 = shalt.err (!%p1628_p7)
}
  0x8b   :  { %120 = dma.hbm_to_vmem [thread:$0]  %s2038_s14, 16, %s118_s9, [#allocation14]  }
  0x8c   :  { %1632 = dma.done.wait [#allocation3], 16  }
  0x8d   :  { %1633 = vsyncadd [#allocation3], 4294967280 }
  0x8e   :  { %1634 = dma.done.wait [#allocation5], 32  }
  0x8f   :  { %1635 = vsyncadd [#allocation5], 4294967264 }
  0x90   :  { %1636 = dma.done.wait [#allocation8], 32  }
  0x91   :  { %1637 = vsyncadd [#allocation8], 4294967264 }
  0x92   :  { %1638 = dma.done.wait [#allocation11], 272  }
  0x93   :  { %1639 = vsyncadd [#allocation11], 4294967024 }
  0x94   :  { %1640 = dma.done.wait [#allocation14], 16  }
  0x95   :  { %1641 = vsyncadd [#allocation14], 4294967280  ;;  %v1652_v0 = vmov 0.0   ;;  %vm1653_vm0 = vmmov 0   ;;  %v1420_v1 = vld [vmem:[%s2026_s2] sm:$0xff]   ;;  %v1421_v2 = vld [vmem:[%s2026_s2 + $0x8] sm:$0xff]  }
  0x96   :  { %1303 = vmatprep.subr.bf16.mxu1 %v1652_v0  ;;  %1295 = vmatprep.subr.bf16.mxu0 %v1652_v0  ;;  %v1422_v3 = vld [vmem:[%s2025_s1] sm:$0xff]   ;;  %v1855_v5 = vld [vmem:[%s2024_s0 + $0x8] sm:$0xff]  ;;  %vm172_vm1 = vcmask 261120   ;;  %vm355_vm2 = vcmask 130048   ;;  %s1654_s9 = smov 112   ;;  %vm402_vm3 = vcmask 64512  }
  0x97   :  { %1307 = vmatprep.mubr.msk.bf16.mxu1 %vm1653_vm0, %v1652_v0  ;;  %1299 = vmatprep.mubr.msk.bf16.mxu0 %vm1653_vm0, %v1652_v0  ;;  %v1850_v4 = vld [vmem:[%s2024_s0] sm:$0xff]  ;;  %v1423_v6 = vld [vmem:[%s2025_s1 + $0x8] sm:$0xff]   ;;  %vm418_vm4 = vcmask 1043456  }
  0x98   :  { %1304 = vmatpush3.bf16.msra.mxu1 %v1420_v1  ;;  %1296 = vmatpush3.bf16.msra.mxu0 %v1422_v3  ;;  %v148_v7 = vpack.c.bf16 %v1855_v5, %v1850_v4  ;;  %v1223_v8 = vld [vmem:[#allocation2] ss:$0 sm:$0xff]  ;;  %v1425_v26 = vld [vmem:[%s2027_s3 + $0x8] sm:$0xff]   ;;  %v1897_v32 = vld [vmem:[#allocation4] ss:$0 sm:$0xff] }
  0x99   :  { %1305 = vmatprep.subr.bf16.mxu1 %v1652_v0  ;;  %1297 = vmatprep.subr.bf16.mxu0 %v1652_v0  ;;  %v1219_v10 = vld [vmem:[%s2028_s4] ss:$0 sm:$0xff] }
  0x9a   :  { %v1424_v25 = vld [vmem:[%s2027_s3] sm:$0xff]  }
  0x9b   :  { %v1426_v52 = vld [vmem:[%s2031_s7] sm:$0xff]  }
  0x9c   :  { %1306 = vmatpush3.bf16.msra.mxu1 %v1421_v2  ;;  %1298 = vmatpush3.bf16.msra.mxu0 %v1423_v6 }
  0x9d   :  { %1319 = vmatprep.subr.bf16.mxu1 %v1652_v0  ;;  %1311 = vmatprep.subr.bf16.mxu0 %v1652_v0 }
  0x9f   :  { %1308 = vmatmul.mubr.msk.bf16.vlgmr.msra.gmra.mrb[0].mxu1 %vm172_vm1, %v148_v7  ;;  %1300 = vmatmul.mubr.msk.bf16.vlgmr.msra.gmra.mrb[0].mxu0 %vm172_vm1, %v148_v7 }
  0xa0   :  { %1321 = vmatprep.mubr.msk.bf16.mxu1 %vm1653_vm0, %v1652_v0  ;;  %1315 = vmatprep.mubr.msk.bf16.mxu0 %vm1653_vm0, %v1652_v0 }
  0xa1   :  { %1312 = vmatpush3.bf16.msra.mxu0 %v1424_v25 }
  0xa2   :  { %1313 = vmatprep.subr.bf16.mxu0 %v1652_v0 }
  0xa5   :  { %1314 = vmatpush3.bf16.msra.mxu0 %v1425_v26 }
  0xa6   :  { %1325 = vmatprep.subr.bf16.mxu0 %v1652_v0 }
  0xa8   :  { %1316 = vmatmul.mubr.msk.bf16.vlgmr.msra.gmra.mrb[4].mxu0 %vm172_vm1, %v148_v7 }
  0xa9   :  { %1327 = vmatprep.mubr.msk.bf16.mxu0 %vm1653_vm0, %v1652_v0 }
 0x172   :  { %v274_v9 = vpop.f32.mrb[0].mxu1  ;;  %v210_v14 = vpop.f32.mrb[0].mxu0 }
 0x173   :  { %v275_v11 = vadd.f32 %v1223_v8, %v274_v9  ;;  %v1309_v12 = vpop.f32.mrb[1].mxu1  ;;  %v211_v18 = vadd.f32 %v1219_v10, %v210_v14  ;;  %v1301_v19 = vpop.f32.mrb[1].mxu0  ;;  %v1928_v9 = vld [vmem:[%s2031_s7 + $0x8] sm:$0xff]  }
 0x174   :  { %v277_v13 = vpop.f32.mrb[2].mxu1  ;;  %v213_v20 = vpop.f32.mrb[2].mxu0 }
 0x175   :  { %v353_v15 = vpack.c.bf16 %v275_v11, %v275_v11  ;;  %v1874_v16 = vadd.f32 %v1223_v8, %v277_v13  ;;  %v1310_v17 = vpop.f32.mrb[3].mxu1  ;;  %v352_v22 = vpack.c.bf16 %v211_v18, %v211_v18  ;;  %v1878_v23 = vadd.f32 %v1219_v10, %v213_v20  ;;  %v1302_v24 = vpop.f32.mrb[3].mxu0 }
 0x177   :  { %v360_v21 = vsel %vm355_vm2, %v353_v15, 0  ;;  %519 = vrot.lane.b32.xlu1 %v353_v15, %s1654_s9  ;;  %v682_v17 = vpack.c.bf16 %v1874_v16, %v1874_v16 }
 0x178   :  { %1320 = vmatpush3.bf16.xpose.msra.mxu1 %v360_v21  ;;  %v681_v21 = vpack.c.bf16 %v1878_v23, %v1878_v23 }
 0x179   :  { %1331 = vmatprep.subr.bf16.mxu1 %v1652_v0  ;;  %v688_v20 = vsel %vm355_vm2, %v682_v17, 0 }
 0x17b   :  { %516 = vrot.lane.b32.xlu1 %v352_v22, %s1654_s9  ;;  %v338_v33 = vpop.f32.mrb[4].mxu0 }
 0x17c   :  { %v339_v34 = vadd.f32 %v1897_v32, %v338_v33  ;;  %v1317_v35 = vpop.f32.mrb[5].mxu0 }
 0x17d   :  { %v1903_v43 = vpop.f32.mrb[6].mxu0 }
 0x17e   :  { %v354_v36 = vpack.c.bf16 %v339_v34, %v339_v34  ;;  %v1318_v44 = vpop.f32.mrb[7].mxu0  ;;  %v342_v16 = vadd.f32 %v1897_v32, %v1903_v43 }
 0x17f   :  { %1322 = vmatmul.mubr.msk.bf16.vlgmr.msra.gmra.mrb[4].mxu1 %vm355_vm2, %v352_v22 }
 0x180   :  { %1333 = vmatprep.mubr.msk.bf16.mxu1 %vm1653_vm0, %v1652_v0  ;;  %v420_v37 = vsel %vm418_vm4, %v354_v36, 0  ;;  %1332 = vmatpush3.bf16.msra.mxu1 %v1426_v52  ;;  %v683_v22 = vpack.c.bf16 %v342_v16, %v342_v16 }
 0x181   :  { %1326 = vmatpush3.bf16.msra.mxu0 %v420_v37  ;;  %1343 = vmatprep.subr.bf16.mxu1 %v1652_v0 }
 0x182   :  { %1337 = vmatprep.subr.bf16.mxu0 %v1652_v0 }
 0x1e9   :  { %v520_v48 = vpop.permute.xlu1 %519 }
 0x1ea   :  { %v525_v50 = vsel %vm355_vm2, %v520_v48, 0 }
 0x1ed   :  { %v517_v51 = vpop.permute.xlu1 %516 }
 0x252   :  { %v396_v27 = vpop.f32.mrb[4].mxu1 }
 0x253   :  { %v1323_v28 = vpop.f32.mrb[5].mxu1  ;;  %v403_v29 = vsel %vm402_vm3, %v396_v27, -inf }
 0x254   :  { %404 = vmax.xlane.f32.xlu0 %v403_v29  ;;  %v399_v30 = vpop.f32.mrb[6].mxu1  ;;  %v746_v28 = vsel %vm418_vm4, %v683_v22, 0 }
 0x255   :  { %v1324_v31 = vpop.f32.mrb[7].mxu1 }
 0x2e1   :  { %v405_v38 = vpop.xlane.xlu0 %404 }
 0x2e2   :  { %v406_v39 = vsub.f32 %v396_v27, %v405_v38 }
 0x2e4   :  { %v407_v40 = vmul.f32 1.442695, %v406_v39  ;;  %v1956_v39 = vld [vmem:[#allocation6] ss:$0 sm:$0xff] }
 0x2e6   :  { %1432 = vpow2.f32 %v407_v40 }
 0x2f0   :  { %v1433_v41 = vpop.eup %1432 }
 0x2f1   :  { %v409_v42 = vsel %vm402_vm3, %v1433_v41, 0.0 }
 0x2f2   :  { %410 = vadd.xlane.f32.xlu0 %v409_v42 }
 0x37f   :  { %v411_v45 = vpop.xlane.xlu0 %410 }
 0x380   :  { %1434 = vrcp.f32 %v411_v45 }
 0x38a   :  { %v1435_v46 = vpop.eup %1434 }
 0x38b   :  { %v413_v47 = vmul.f32 %v1435_v46, %v1433_v41 }
 0x38d   :  { %v414_v49 = vpack.c.bf16 %v413_v47, %v413_v47 }
 0x38f   :  { %1328 = vmatmul.mubr.msk.bf16.vlgmr.msra.gmra.mrb[8].mxu0 %vm402_vm3, %v414_v49 }
 0x390   :  { %1338 = vmatpush3.bf16.xpose.msra.mxu0 %v525_v50  ;;  %1339 = vmatprep.mubr.msk.bf16.mxu0 %vm1653_vm0, %v1652_v0 }
 0x391   :  { %1349 = vmatprep.subr.bf16.mxu0 %v1652_v0 }
 0x397   :  { %1340 = vmatmul.mubr.msk.bf16.vlgmr.msra.gmra.mrb[12].mxu0 %vm355_vm2, %v517_v51 }
 0x398   :  { %1351 = vmatprep.mubr.msk.bf16.mxu0 %vm1653_vm0, %v1652_v0  ;;  %1350 = vmatpush3.bf16.msra.mxu0 %v1928_v9 }
 0x399   :  { %1361 = vmatprep.subr.bf16.mxu0 %v1652_v0 }
 0x462   :  { %v456_v53 = vpop.f32.mrb[8].mxu0 }
 0x463   :  { %v462_v54 = vpack.c.bf16 %v456_v53, %v456_v53  ;;  %v1329_v55 = vpop.f32.mrb[9].mxu0 }
 0x464   :  { %v459_v56 = vpop.f32.mrb[10].mxu0 }
 0x465   :  { %v1330_v57 = vpop.f32.mrb[11].mxu0  ;;  %1334 = vmatmul.mubr.msk.bf16.vlgmr.msra.gmra.mrb[8].mxu1 %vm355_vm2, %v462_v54 }
 0x466   :  { %1345 = vmatprep.mubr.msk.bf16.mxu1 %vm1653_vm0, %v1652_v0 }
 0x46a   :  { %v561_v58 = vpop.f32.mrb[12].mxu0 }
 0x46b   :  { %v1341_v59 = vpop.f32.mrb[13].mxu0  ;;  %v567_v60 = vsel %vm402_vm3, %v561_v58, -inf }
 0x46c   :  { %568 = vmax.xlane.f32.xlu0 %v567_v60  ;;  %v564_v61 = vpop.f32.mrb[14].mxu0 }
 0x46d   :  { %v1342_v62 = vpop.f32.mrb[15].mxu0 }
 0x482   :  { %580 = vrot.lane.b32.xlu0 %v354_v36, %s1654_s9 }
 0x4f9   :  { %v569_v63 = vpop.xlane.xlu0 %568 }
 0x4fa   :  { %v570_v1 = vsub.f32 %v561_v58, %v569_v63 }
 0x4fc   :  { %v571_v2 = vmul.f32 1.442695, %v570_v1 }
 0x4fd   :  { %v581_v3 = vpop.permute.xlu0 %580 }
 0x4fe   :  { %1436 = vpow2.f32 %v571_v2  ;;  %v586_v6 = vsel %vm418_vm4, %v581_v3, 0 }
 0x4ff   :  { %1344 = vmatpush3.bf16.msra.mxu1 %v586_v6 }
 0x500   :  { %1355 = vmatprep.subr.bf16.mxu1 %v1652_v0 }
 0x508   :  { %v1437_v7 = vpop.eup %1436 }
 0x509   :  { %v573_v8 = vsel %vm402_vm3, %v1437_v7, 0.0 }
 0x50a   :  { %574 = vadd.xlane.f32.xlu1 %v573_v8 }
 0x538   :  { %v508_v10 = vpop.f32.mrb[8].mxu1 }
 0x539   :  { %v1335_v11 = vpop.f32.mrb[9].mxu1  ;;  %v514_v40 = vadd.f32 %v1956_v39, %v508_v10 }
 0x53a   :  { %v511_v12 = vpop.f32.mrb[10].mxu1 }
 0x53b   :  { %v1336_v13 = vpop.f32.mrb[11].mxu1 }
 0x597   :  { %v575_v14 = vpop.xlane.xlu1 %574 }
 0x598   :  { %1438 = vrcp.f32 %v575_v14 }
 0x5a2   :  { %v1439_v15 = vpop.eup %1438 }
 0x5a3   :  { %v577_v18 = vmul.f32 %v1439_v15, %v1437_v7 }
 0x5a5   :  { %v578_v19 = vpack.c.bf16 %v577_v18, %v577_v18 }
 0x5a7   :  { %1346 = vmatmul.mubr.msk.bf16.vlgmr.msra.gmra.mrb[12].mxu1 %vm402_vm3, %v578_v19 }
 0x5a8   :  { %1356 = vmatpush3.bf16.xpose.msra.mxu1 %v688_v20  ;;  %1357 = vmatprep.mubr.msk.bf16.mxu1 %vm1653_vm0, %v1652_v0 }
 0x5a9   :  { %1367 = vmatprep.subr.bf16.mxu1 %v1652_v0 }
 0x5af   :  { %1358 = vmatmul.mubr.msk.bf16.vlgmr.msra.gmra.mrb[16].mxu1 %vm355_vm2, %v681_v21 }
 0x5b0   :  { %1368 = vmatpush3.bf16.msra.mxu1 %v1426_v52  ;;  %1369 = vmatprep.mubr.msk.bf16.mxu1 %vm1653_vm0, %v1652_v0 }
 0x5b1   :  { %1379 = vmatprep.subr.bf16.mxu1 %v1652_v0 }
 0x67a   :  { %v622_v24 = vpop.f32.mrb[12].mxu1 }
 0x67b   :  { %v628_v25 = vpack.c.bf16 %v622_v24, %v622_v24  ;;  %v1347_v26 = vpop.f32.mrb[13].mxu1 }
 0x67c   :  { %v625_v27 = vpop.f32.mrb[14].mxu1 }
 0x67d   :  { %v1348_v29 = vpop.f32.mrb[15].mxu1  ;;  %1352 = vmatmul.mubr.msk.bf16.vlgmr.msra.gmra.mrb[16].mxu0 %vm355_vm2, %v628_v25 }
 0x67e   :  { %1362 = vmatpush3.bf16.msra.mxu0 %v746_v28  ;;  %1363 = vmatprep.mubr.msk.bf16.mxu0 %vm1653_vm0, %v1652_v0 }
 0x67f   :  { %1373 = vmatprep.subr.bf16.mxu0 %v1652_v0 }
 0x682   :  { %v724_v23 = vpop.f32.mrb[16].mxu1 }
 0x683   :  { %v1359_v30 = vpop.f32.mrb[17].mxu1  ;;  %v730_v31 = vsel %vm402_vm3, %v724_v23, -inf }
 0x684   :  { %731 = vmax.xlane.f32.xlu0 %v730_v31  ;;  %v727_v32 = vpop.f32.mrb[18].mxu1 }
 0x685   :  { %v1360_v33 = vpop.f32.mrb[19].mxu1 }
 0x69a   :  { %834 = vrot.lane.b32.xlu0 %v681_v21, %s1654_s9 }
 0x711   :  { %v732_v34 = vpop.xlane.xlu0 %731 }
 0x712   :  { %v733_v35 = vsub.f32 %v724_v23, %v732_v34 }
 0x714   :  { %v734_v36 = vmul.f32 1.442695, %v733_v35 }
 0x715   :  { %v835_v52 = vpop.permute.xlu0 %834 }
 0x716   :  { %1440 = vpow2.f32 %v734_v36 }
 0x720   :  { %v1441_v37 = vpop.eup %1440 }
 0x721   :  { %v736_v38 = vsel %vm402_vm3, %v1441_v37, 0.0 }
 0x722   :  { %737 = vadd.xlane.f32.xlu1 %v736_v38 }
 0x733   :  { %837 = vrot.lane.b32.xlu1 %v682_v17, %s1654_s9 }
 0x750   :  { %v674_v41 = vpop.f32.mrb[16].mxu0 }
 0x751   :  { %v680_v42 = vadd.f32 %v674_v41, %v514_v40  ;;  %v1353_v43 = vpop.f32.mrb[17].mxu0 }
 0x752   :  { %v677_v44 = vpop.f32.mrb[18].mxu0 }
 0x753   :  { %v1354_v45 = vpop.f32.mrb[19].mxu0 }
 0x7af   :  { %v738_v46 = vpop.xlane.xlu1 %737 }
 0x7b0   :  { %1442 = vrcp.f32 %v738_v46 }
 0x7b3   :  { %v838_v49 = vpop.permute.xlu1 %837 }
 0x7b4   :  { %v843_v51 = vsel %vm355_vm2, %v838_v49, 0  ;;  %v1997_v49 = vld [vmem:[#allocation7] ss:$0 sm:$0xff] }
 0x7ba   :  { %v1443_v47 = vpop.eup %1442 }
 0x7bb   :  { %v740_v48 = vmul.f32 %v1443_v47, %v1441_v37 }
 0x7bd   :  { %v741_v50 = vpack.c.bf16 %v740_v48, %v740_v48 }
 0x7bf   :  { %1364 = vmatmul.mubr.msk.bf16.vlgmr.msra.gmra.mrb[20].mxu0 %vm402_vm3, %v741_v50 }
 0x7c0   :  { %1374 = vmatpush3.bf16.xpose.msra.mxu0 %v843_v51  ;;  %1375 = vmatprep.mubr.msk.bf16.mxu0 %vm1653_vm0, %v1652_v0 }
 0x7c1   :  { %1385 = vmatprep.subr.bf16.mxu0 %v1652_v0 }
 0x7c7   :  { %1376 = vmatmul.mubr.msk.bf16.vlgmr.msra.gmra.mrb[24].mxu0 %vm355_vm2, %v835_v52 }
 0x7c8   :  { %1386 = vmatpush3.bf16.msra.mxu0 %v1928_v9  ;;  %1387 = vmatprep.mubr.msk.bf16.mxu0 %vm1653_vm0, %v1652_v0  ;;  %v993_v9 = vadd.f32 %v680_v42, %v1850_v4  ;;  %v1429_v42 = vld [vmem:[%s2035_s11 + $0x8] sm:$0xff]  }
 0x7c9   :  { %1399 = vmatprep.subr.bf16.mxu0 %v1652_v0 }
 0x7ca   :  { %v995_v10 = vsel %vm172_vm1, %v993_v9, 0.0 }
 0x892   :  { %v782_v53 = vpop.f32.mrb[20].mxu0 }
 0x893   :  { %v788_v54 = vpack.c.bf16 %v782_v53, %v782_v53  ;;  %v1365_v55 = vpop.f32.mrb[21].mxu0 }
 0x894   :  { %v785_v56 = vpop.f32.mrb[22].mxu0 }
 0x895   :  { %v1366_v57 = vpop.f32.mrb[23].mxu0  ;;  %1370 = vmatmul.mubr.msk.bf16.vlgmr.msra.gmra.mrb[20].mxu1 %vm355_vm2, %v788_v54  ;;  %v2001_v54 = vld [vmem:[#allocation9] ss:$0 sm:$0xff] }
 0x896   :  { %1381 = vmatprep.mubr.msk.bf16.mxu1 %vm1653_vm0, %v1652_v0 }
 0x89a   :  { %v879_v58 = vpop.f32.mrb[24].mxu0 }
 0x89b   :  { %v1377_v59 = vpop.f32.mrb[25].mxu0  ;;  %v885_v60 = vsel %vm402_vm3, %v879_v58, -inf }
 0x89c   :  { %886 = vmax.xlane.f32.xlu1 %v885_v60  ;;  %v882_v61 = vpop.f32.mrb[26].mxu0  ;;  %v1430_v59 = vld [vmem:[#allocation12] sm:$0xff]   ;;  %v1431_v60 = vld [vmem:[#allocation12 + $0x8] sm:$0xff]  }
 0x89d   :  { %v1378_v62 = vpop.f32.mrb[27].mxu0  ;;  %v1248_v61 = vld [vmem:[#allocation10] ss:$0 sm:$0xff] }
 0x8ad   :  { %898 = vrot.lane.b32.xlu1 %v683_v22, %s1654_s9 }
 0x929   :  { %v887_v63 = vpop.xlane.xlu1 %886 }
 0x92a   :  { %v888_v1 = vsub.f32 %v879_v58, %v887_v63 }
 0x92c   :  { %v889_v2 = vmul.f32 1.442695, %v888_v1 }
 0x92d   :  { %v899_v3 = vpop.permute.xlu1 %898 }
 0x92e   :  { %1444 = vpow2.f32 %v889_v2  ;;  %v904_v6 = vsel %vm418_vm4, %v899_v3, 0 }
 0x92f   :  { %1380 = vmatpush3.bf16.msra.mxu1 %v904_v6 }
 0x930   :  { %1391 = vmatprep.subr.bf16.mxu1 %v1652_v0 }
 0x938   :  { %v1445_v7 = vpop.eup %1444 }
 0x939   :  { %v891_v8 = vsel %vm402_vm3, %v1445_v7, 0.0 }
 0x93a   :  { %892 = vadd.xlane.f32.xlu0 %v891_v8 }
 0x93e   :  { %996 = vadd.xlane.f32.xlu0 %v995_v10  ;;  %v1252_v10 = vld [vmem:[#allocation13] ss:$0 sm:$0xff] }
 0x968   :  { %v826_v11 = vpop.f32.mrb[20].mxu1 }
 0x969   :  { %v1371_v12 = vpop.f32.mrb[21].mxu1  ;;  %v832_v29 = vadd.f32 %v1956_v39, %v826_v11  ;;  %v1428_v39 = vld [vmem:[%s2035_s11] sm:$0xff]  }
 0x96a   :  { %v829_v13 = vpop.f32.mrb[22].mxu1 }
 0x96b   :  { %v1372_v14 = vpop.f32.mrb[23].mxu1 }
 0x9c7   :  { %v893_v15 = vpop.xlane.xlu0 %892 }
 0x9c8   :  { %1446 = vrcp.f32 %v893_v15 }
 0x9cb   :  { %v997_v17 = vpop.xlane.xlu0 %996 }
 0x9cc   :  { %v1002_v18 = vmul.f32 0.03125, %v997_v17 }
 0x9ce   :  { %v1004_v19 = vsub.f32 %v993_v9, %v1002_v18 }
 0x9d0   :  { %v1006_v20 = vmul.f32 %v1004_v19, %v1004_v19 }
 0x9d2   :  { %v1447_v21 = vpop.eup %1446  ;;  %v1008_v16 = vsel %vm172_vm1, %v1006_v20, 0.0 }
 0x9d3   :  { %v895_v22 = vmul.f32 %v1447_v21, %v1445_v7  ;;  %1009 = vadd.xlane.f32.xlu0 %v1008_v16 }
 0x9d5   :  { %v896_v4 = vpack.c.bf16 %v895_v22, %v895_v22 }
 0x9d7   :  { %1382 = vmatmul.mubr.msk.bf16.vlgmr.msra.gmra.mrb[24].mxu1 %vm402_vm3, %v896_v4 }
 0x9d8   :  { %1395 = vmatprep.mubr.msk.bf16.mxu1 %vm1653_vm0, %v1652_v0  ;;  %1392 = vmatpush3.bf16.msra.mxu1 %v1428_v39 }
 0x9d9   :  { %1393 = vmatprep.subr.bf16.mxu1 %v1652_v0 }
 0x9dc   :  { %1394 = vmatpush3.bf16.msra.mxu1 %v1429_v42 }
 0xaaa   :  { %v940_v24 = vpop.f32.mrb[24].mxu1 }
 0xaab   :  { %v946_v25 = vpack.c.bf16 %v940_v24, %v940_v24  ;;  %v1383_v26 = vpop.f32.mrb[25].mxu1 }
 0xaac   :  { %v943_v27 = vpop.f32.mrb[26].mxu1 }
 0xaad   :  { %v1384_v28 = vpop.f32.mrb[27].mxu1  ;;  %1388 = vmatmul.mubr.msk.bf16.vlgmr.msra.gmra.mrb[28].mxu0 %vm355_vm2, %v946_v25 }
 0xaae   :  { %1403 = vmatprep.mubr.msk.bf16.mxu0 %vm1653_vm0, %v1652_v0  ;;  %1400 = vmatpush3.bf16.msra.mxu0 %v1430_v59 }
 0xaaf   :  { %1401 = vmatprep.subr.bf16.mxu0 %v1652_v0 }
 0xab2   :  { %1402 = vmatpush3.bf16.msra.mxu0 %v1431_v60 }
 0xb80   :  { %v984_v23 = vpop.f32.mrb[28].mxu0 }
 0xb81   :  { %v990_v30 = vadd.f32 %v984_v23, %v832_v29  ;;  %v1389_v31 = vpop.f32.mrb[29].mxu0 }
 0xb82   :  { %v987_v32 = vpop.f32.mrb[30].mxu0 }
 0xb83   :  { %v1390_v33 = vpop.f32.mrb[31].mxu0  ;;  %v994_v34 = vadd.f32 %v990_v30, %v1855_v5  ;;  %v1010_v5 = vpop.xlane.xlu0 %1009 }
 0xb84   :  { %v1014_v43 = vmul.f32 0.03125, %v1010_v5 }
 0xb85   :  { %v998_v35 = vsel %vm172_vm1, %v994_v34, 0.0 }
 0xb86   :  { %999 = vadd.xlane.f32.xlu1 %v998_v35  ;;  %v1016_v44 = vadd.f32 1e-05, %v1014_v43 }
 0xb88   :  { %1448 = vrsqrt.f32 %v1016_v44 }
 0xb92   :  { %v1449_v48 = vpop.eup %1448 }
 0xb93   :  { %v1026_v50 = vmul.f32 %v1449_v48, %v1997_v49 }
 0xb95   :  { %v1028_v52 = vmul.f32 %v1026_v50, %v1004_v19 }
 0xb97   :  { %v1036_v56 = vadd.f32 %v2001_v54, %v1028_v52 }
 0xc13   :  { %v1000_v36 = vpop.xlane.xlu1 %999 }
 0xc14   :  { %v1003_v37 = vmul.f32 0.03125, %v1000_v36 }
 0xc16   :  { %v1005_v38 = vsub.f32 %v994_v34, %v1003_v37 }
 0xc18   :  { %v1007_v40 = vmul.f32 %v1005_v38, %v1005_v38 }
 0xc1a   :  { %v1011_v41 = vsel %vm172_vm1, %v1007_v40, 0.0 }
 0xc1b   :  { %1012 = vadd.xlane.f32.xlu0 %v1011_v41 }
 0xca8   :  { %v1013_v45 = vpop.xlane.xlu0 %1012 }
 0xca9   :  { %v1015_v46 = vmul.f32 0.03125, %v1013_v45 }
 0xcab   :  { %v1017_v47 = vadd.f32 1e-05, %v1015_v46 }
 0xcad   :  { %1450 = vrsqrt.f32 %v1017_v47 }
 0xcb7   :  { %v1451_v51 = vpop.eup %1450 }
 0xcb8   :  { %v1027_v53 = vmul.f32 %v1451_v51, %v1997_v49 }
 0xcba   :  { %v1029_v55 = vmul.f32 %v1027_v53, %v1005_v38 }
 0xcbc   :  { %v1037_v57 = vadd.f32 %v2001_v54, %v1029_v55 }
 0xcbe   :  { %v1038_v58 = vpack.c.bf16 %v1037_v57, %v1036_v56 }
 0xcc0   :  { %1396 = vmatmul.mubr.msk.bf16.vlgmr.msra.gmra.mrb[28].mxu1 %vm172_vm1, %v1038_v58 }
 0xd93   :  { %v1099_v62 = vpop.f32.mrb[28].mxu1 }
 0xd94   :  { %v1100_v63 = vadd.f32 %v1248_v61, %v1099_v62  ;;  %v1397_v1 = vpop.f32.mrb[29].mxu1 }
 0xd95   :  { %v1102_v2 = vpop.f32.mrb[30].mxu1 }
 0xd96   :  { %v1103_v3 = vadd.f32 %v1248_v61, %v1102_v2  ;;  %v1398_v6 = vpop.f32.mrb[31].mxu1  ;;  %v1106_v7 = vmax.f32 %v1100_v63, 0.0 }
 0xd98   :  { %v1107_v8 = vmax.f32 %v1103_v3, 0.0 }
 0xd9a   :  { %v1108_v9 = vpack.c.bf16 %v1107_v8, %v1106_v7 }
 0xd9c   :  { %1404 = vmatmul.mubr.msk.bf16.vlgmr.msra.gmra.mrb[32].mxu0 %vm172_vm1, %v1108_v9 }
 0xe6f   :  { %v1169_v11 = vpop.f32.mrb[32].mxu0 }
 0xe70   :  { %v1170_v12 = vadd.f32 %v1252_v10, %v1169_v11  ;;  %v1405_v13 = vpop.f32.mrb[33].mxu0 }
 0xe71   :  { %v1172_v14 = vpop.f32.mrb[34].mxu0 }
 0xe72   :  { %v1173_v0 = vadd.f32 %v1252_v10, %v1172_v14  ;;  %v1406_v15 = vpop.f32.mrb[35].mxu0  ;;  %v1176_v17 = vadd.f32 %v1170_v12, %v1036_v56 }
 0xe74   :  { %v1178_v18 = vsel %vm172_vm1, %v1176_v17, 0.0  ;;  %v1177_v19 = vadd.f32 %v1173_v0, %v1037_v57 }
 0xe75   :  { %1179 = vadd.xlane.f32.xlu0 %v1178_v18 }
 0xe76   :  { %v1181_v20 = vsel %vm172_vm1, %v1177_v19, 0.0 }
 0xe79   :  { %1182 = vadd.xlane.f32.xlu0 %v1181_v20 }
 0xf02   :  { %v1180_v21 = vpop.xlane.xlu0 %1179 }
 0xf03   :  { %v1184_v16 = vmul.f32 0.03125, %v1180_v21 }
 0xf05   :  { %v1186_v22 = vsub.f32 %v1176_v17, %v1184_v16 }
 0xf06   :  { %v1183_v4 = vpop.xlane.xlu0 %1182 }
 0xf07   :  { %v1185_v24 = vmul.f32 0.03125, %v1183_v4  ;;  %v1188_v25 = vmul.f32 %v1186_v22, %v1186_v22 }
 0xf09   :  { %v1187_v26 = vsub.f32 %v1177_v19, %v1185_v24  ;;  %v1190_v27 = vsel %vm172_vm1, %v1188_v25, 0.0 }
 0xf0a   :  { %1191 = vadd.xlane.f32.xlu0 %v1190_v27 }
 0xf0b   :  { %v1189_v28 = vmul.f32 %v1187_v26, %v1187_v26 }
 0xf0d   :  { %v1193_v29 = vsel %vm172_vm1, %v1189_v28, 0.0 }
 0xf0e   :  { %1194 = vadd.xlane.f32.xlu0 %v1193_v29 }
 0xf97   :  { %v1192_v23 = vpop.xlane.xlu0 %1191 }
 0xf98   :  { %v1196_v30 = vmul.f32 0.03125, %v1192_v23 }
 0xf9a   :  { %v1198_v31 = vadd.f32 1e-05, %v1196_v30 }
 0xf9b   :  { %v1195_v32 = vpop.xlane.xlu0 %1194 }
 0xf9c   :  { %1452 = vrsqrt.f32 %v1198_v31  ;;  %v1197_v33 = vmul.f32 0.03125, %v1195_v32 }
 0xf9e   :  { %v1199_v34 = vadd.f32 1e-05, %v1197_v33 }
 0xfa0   :  { %1454 = vrsqrt.f32 %v1199_v34 }
 0xfa6   :  { %v1453_v35 = vpop.eup %1452 }
 0xfa7   :  { %v1202_v36 = vmul.f32 %v1453_v35, %v1997_v49 }
 0xfa9   :  { %v1204_v37 = vmul.f32 %v1202_v36, %v1186_v22 }
 0xfaa   :  { %v1455_v38 = vpop.eup %1454 }
 0xfab   :  { %v1206_v40 = vadd.f32 %v2001_v54, %v1204_v37  ;;  %v1203_v41 = vmul.f32 %v1455_v38, %v1997_v49 }
 0xfad   :  { %1208 = vst.msk [vmem:[%s2039_s15] sm:$0xff] %vm172_vm1, %v1206_v40  ;;  %v1205_v39 = vmul.f32 %v1203_v41, %v1187_v26 }
 0xfaf   :  { %v1207_v42 = vadd.f32 %v2001_v54, %v1205_v39 }
 0xfb1   :  { %1209 = vst.msk [vmem:[%s2039_s15 + $0x8] sm:$0xff] %vm172_vm1, %v1207_v42 }
 0xfb2   :  { %1214 = vsyncpa [#allocation3], 1 }
 0xfb3   :  { %1215 = vsyncpa [#allocation5], 1 }
 0xfb4   :  { %1216 = vsyncpa [#allocation8], 1 }
 0xfb5   :  { %1217 = vsyncpa [#allocation11], 1 }
 0xfb6   :  { %1218 = vsyncpa [#allocation14], 1 }

</bundles_post_ra>
